<compile_context>
chip_gen: v7x
topology: tpu7x:2x2x1
jax: 0.10.0
libtpu: 0.0.40
codegen_flags: <defaults>
</compile_context>

<pallas_src>
import jax
import jax.numpy as jnp
import numpy as np
from jax.experimental import pallas as pl
from jax.experimental.pallas import tpu as pltpu

_VMEM_LIMIT = 32 * 1024 * 1024  # <= default scoped VMEM on every generation


# ---------------------------------------------------------------------------
# Kernels
# ---------------------------------------------------------------------------
def _proj_kernel(img_ref, txt_ref, wi_ref, wt_ref, bi_ref, bt_ref,
                 ie_ref, te_ref):
    """One batch tile: both Linear projections + L2-normalize (+1e-8).

    Features arrive f32 and are cast to bf16 on the VPU (hidden under the
    MXU); weights are bf16 and VMEM-resident across batch tiles; accumulation,
    bias, normalize and outputs are f32.
    """
    def project(f_ref, w_ref, b_ref):
        f = f_ref[...].astype(jnp.bfloat16)
        e = jnp.dot(f, w_ref[...], preferred_element_type=jnp.float32)
        e = e + b_ref[...]
        norm = jnp.sqrt(jnp.sum(e * e, axis=-1, keepdims=True))
        return e / (norm + 1e-8)   # exact; matches torch `x / (norm + 1e-8)`

    ie_ref[...] = project(img_ref, wi_ref, bi_ref)
    te_ref[...] = project(txt_ref, wt_ref, bt_ref)


def _logits_kernel(ie_ref, te_ref, scale_ref, o_ref):
    """One (TILE_I x TILE_J) tile of exp(logit_scale) * img_e @ txt_e.T.

    exp(logit_scale) is folded into the image-embed bf16 cast (O(TILE_I*D)
    VPU work), so the body is a pure MXU contraction + lane-dense store.
    The transpose is folded into the contraction (no XLU work).
    """
    ie = (ie_ref[...] * scale_ref[0, 0]).astype(jnp.bfloat16)
    te = te_ref[...].astype(jnp.bfloat16)
    o_ref[...] = jax.lax.dot_general(
        ie, te,
        dimension_numbers=(((1,), (1,)), ((), ())),
        preferred_element_type=jnp.float32)


# ---------------------------------------------------------------------------
# Wrapper
# ---------------------------------------------------------------------------
def _round_up(x, m):
    return ((x + m - 1) // m) * m


def _batch_tiling(B):
    """Return (B_pad, TILE_B).  Small B -> single tile, no padding."""
    if B <= 1024:
        return B, B
    for t in (1024, 512, 256, 128):
        if B % t == 0:
            return B, t
    # Awkward large sizes: pad up to big tiles instead of many 128-row tiles.
    return _round_up(B, 1024), 1024


@jax.jit
def clip_multimodal_forward(image_features, text_features, params):
    """Mirrors CLIPMultiModalModel.forward(image_batch, text_batch) given the
    (frozen, float32-cast) CLIP backbone feature outputs."""
    f32, bf16 = jnp.float32, jnp.bfloat16

    B, D_IN = image_features.shape
    D_OUT = params["image_projection_w"].shape[1]

    B_pad, TILE_B = _batch_tiling(B)
    nb = B_pad // TILE_B

    img = image_features.astype(f32)
    txt = text_features.astype(f32)
    if B_pad != B:
        pad = ((0, B_pad - B), (0, 0))
        img = jnp.pad(img, pad)
        txt = jnp.pad(txt, pad)

    w_img = params["image_projection_w"].astype(bf16)
    w_txt = params["text_projection_w"].astype(bf16)
    b_img = params["image_projection_b"].astype(f32).reshape(1, D_OUT)
    b_txt = params["text_projection_b"].astype(f32).reshape(1, D_OUT)

    # ---------------- projection + L2-normalize ----------------------------
    image_embed_p, text_embed_p = pl.pallas_call(
        _proj_kernel,
        out_shape=(
            jax.ShapeDtypeStruct((B_pad, D_OUT), f32),
            jax.ShapeDtypeStruct((B_pad, D_OUT), f32),
        ),
        grid=(nb,),
        in_specs=[
            pl.BlockSpec((TILE_B, D_IN), lambda b: (b, 0)),
            pl.BlockSpec((TILE_B, D_IN), lambda b: (b, 0)),
            pl.BlockSpec((D_IN, D_OUT), lambda b: (0, 0)),   # VMEM-resident
            pl.BlockSpec((D_IN, D_OUT), lambda b: (0, 0)),   # VMEM-resident
            pl.BlockSpec((1, D_OUT), lambda b: (0, 0)),
            pl.BlockSpec((1, D_OUT), lambda b: (0, 0)),
        ],
        out_specs=(
            pl.BlockSpec((TILE_B, D_OUT), lambda b: (b, 0)),
            pl.BlockSpec((TILE_B, D_OUT), lambda b: (b, 0)),
        ),
        compiler_params=pltpu.CompilerParams(
            dimension_semantics=("parallel",),
            vmem_limit_bytes=_VMEM_LIMIT),
    )(img, txt, w_img, w_txt, b_img, b_txt)

    # ---------------- similarity logits -------------------------------------
    TILE_I = TILE_B
    # Row strip: full text embeds resident in VMEM (fetched once).  For very
    # large batches fall back to square tiling (v7x has only 64 MiB VMEM).
    TILE_J = B_pad if B_pad <= 2048 else TILE_B
    nti, ntj = B_pad // TILE_I, B_pad // TILE_J

    scale = jnp.exp(params["logit_scale"].astype(f32)).reshape(1, 1)

    logits_pad = pl.pallas_call(
        _logits_kernel,
        out_shape=jax.ShapeDtypeStruct((B_pad, B_pad), f32),
        grid=(nti, ntj),
        in_specs=[
            pl.BlockSpec((TILE_I, D_OUT), lambda i, j: (i, 0)),
            pl.BlockSpec((TILE_J, D_OUT), lambda i, j: (j, 0)),
            pl.BlockSpec(memory_space=pltpu.MemorySpace.SMEM),
        ],
        out_specs=pl.BlockSpec((TILE_I, TILE_J), lambda i, j: (i, j)),
        compiler_params=pltpu.CompilerParams(
            dimension_semantics=("parallel", "parallel"),
            vmem_limit_bytes=_VMEM_LIMIT),
    )(image_embed_p, text_embed_p, scale)

    # Slice padding; logits_per_text is just the transpose (no second BxB
    # kernel writeback).  NOTE: padded embed rows [B:B_pad] are zeros here
    # (zero features + zero bias) but are never consumed unsliced.
    image_embed = image_embed_p[:B]
    text_embed = text_embed_p[:B]
    logits_per_image = logits_pad[:B, :B]
    logits_per_text = logits_per_image.T

    return {
        "image_features": image_features,
        "image_embed": image_embed,
        "text_features": text_features,
        "text_embed": text_embed,
        "logits_per_image": logits_per_image,
        "logits_per_text": logits_per_text,
    }


# ---------------------------------------------------------------------------
# Parameter init (matches the module's __init__)
# ---------------------------------------------------------------------------
def init_params(key, embedding_dim, embed_dim):
    """xavier_uniform_ weights, zero biases, logit_scale = log(1/0.07)."""
    k_img, k_txt = jax.random.split(key)
    bound = float(np.sqrt(6.0 / (embedding_dim + embed_dim)))
    img_w = jax.random.uniform(k_img, (embedding_dim, embed_dim),
                               jnp.float32, minval=-bound, maxval=bound)
    txt_w = jax.random.uniform(k_txt, (embedding_dim, embed_dim),
                               jnp.float32, minval=-bound, maxval=bound)
    return {
        "image_projection_w": img_w,
        "image_projection_b": jnp.zeros((embed_dim,), jnp.float32),
        "text_projection_w": txt_w,
        "text_projection_b": jnp.zeros((embed_dim,), jnp.float32),
        "logit_scale": jnp.asarray(np.log(1.0 / 0.07), jnp.float32),
    }


# ---------------------------------------------------------------------------
# Reference (same dtype policy: bf16 matmul operands, f32 accumulate)
# ---------------------------------------------------------------------------
def _ref_forward(img_f, txt_f, p):
    bf16 = jnp.bfloat16
    ie = jnp.dot(img_f.astype(bf16), p["image_projection_w"].astype(bf16),
                 preferred_element_type=jnp.float32) + p["image_projection_b"]
    te = jnp.dot(txt_f.astype(bf16), p["text_projection_w"].astype(bf16),
                 preferred_element_type=jnp.float32) + p["text_projection_b"]
    ie = ie / (jnp.linalg.norm(ie, axis=-1, keepdims=True) + 1e-8)
    te = te / (jnp.linalg.norm(te, axis=-1, keepdims=True) + 1e-8)
    scale = jnp.exp(p["logit_scale"])
    lpi = jnp.dot((scale * ie).astype(bf16), te.astype(bf16).T,
                  preferred_element_type=jnp.float32)
    return ie, te, lpi


def _check(results, image_features, text_features, params):
    ie_r, te_r, lpi_r = _ref_forward(image_features, text_features, params)
    np.testing.assert_allclose(results["image_embed"], ie_r,
                               rtol=1e-2, atol=2e-3)
    np.testing.assert_allclose(results["text_embed"], te_r,
                               rtol=1e-2, atol=2e-3)
    np.testing.assert_allclose(results["logits_per_image"], lpi_r,
                               rtol=2e-2, atol=5e-2)
    np.testing.assert_allclose(results["logits_per_text"], lpi_r.T,
                               rtol=2e-2, atol=5e-2)
    assert np.allclose(np.asarray(results["logits_per_text"]),
                       np.asarray(results["logits_per_image"]).T)


if __name__ == "__main__":
    key = jax.random.PRNGKey(0)

    # --- Test 1: small, unaligned shapes (single-tile path, zero padding) ---
    B, D_IN, D_OUT = 10, 200, 96
    k_params, k_img, k_txt, key = jax.random.split(key, 4)
    params = init_params(k_params, D_IN, D_OUT)
    image_features = jax.random.normal(k_img, (B, D_IN), jnp.float32)
    text_features = jax.random.normal(k_txt, (B, D_IN), jnp.float32)
    results = clip_multimodal_forward(image_features, text_features, params)
    jax.block_until_ready(results)
    _check(results, image_features, text_features, params)

    # --- Test 2: real head dims, multi-tile + padded batch + row-strip ------
    B2, D_IN2, D_OUT2 = 1300, 512, 256   # ViT-B/32: D_IN=512, embed_dim=256
    k_params2, k_img2, k_txt2, key = jax.random.split(key, 4)
    params2 = init_params(k_params2, D_IN2, D_OUT2)
    image_features2 = jax.random.normal(k_img2, (B2, D_IN2), jnp.float32)
    text_features2 = jax.random.normal(k_txt2, (B2, D_IN2), jnp.float32)
    results2 = clip_multimodal_forward(image_features2, text_features2, params2)
    jax.block_until_ready(results2)
    _check(results2, image_features2, text_features2, params2)

    print("KERNEL_OK")
</pallas_src>

<mosaic_0001>
module attributes {stable_mosaic.version = 11 : i64} {
  func.func @_logits_kernel(%arg0: i32, %arg1: i32, %arg2: memref<10x96xf32, #tpu.memory_space<vmem>>, %arg3: memref<10x96xf32, #tpu.memory_space<vmem>>, %arg4: memref<1x1xf32, #tpu.memory_space<smem>>, %arg5: memref<10x10xf32, #tpu.memory_space<vmem>>) attributes {dimension_semantics = [#tpu.dimension_semantics<parallel>, #tpu.dimension_semantics<parallel>], iteration_bounds = array<i64: 1, 1>, scalar_prefetch = 0 : i64, scratch_operands = 0 : i64, tpu.core_type = #tpu.core_type<tc>, window_params = [{transform_indices = @transform_0, window_bounds = array<i64: 10, 96>}, {transform_indices = @transform_1, window_bounds = array<i64: 10, 96>}, {transform_indices = @transform_2, window_bounds = array<i64: 1, 1>}, {transform_indices = @transform_3, window_bounds = array<i64: 10, 10>}]} {
    %c0 = arith.constant 0 : index
    %c0_0 = arith.constant 0 : index
    %0 = vector.load %arg2[%c0, %c0_0] : memref<10x96xf32, #tpu.memory_space<vmem>>, vector<10x96xf32>
    %c0_1 = arith.constant 0 : index
    %c0_2 = arith.constant 0 : index
    %1 = memref.load %arg4[%c0_1, %c0_2] : memref<1x1xf32, #tpu.memory_space<smem>>
    %2 = vector.broadcast %1 : f32 to vector<10x96xf32>
    %3 = arith.mulf %0, %2 : vector<10x96xf32>
    %4 = arith.truncf %3 : vector<10x96xf32> to vector<10x96xbf16>
    %c0_3 = arith.constant 0 : index
    %c0_4 = arith.constant 0 : index
    %5 = vector.load %arg3[%c0_3, %c0_4] : memref<10x96xf32, #tpu.memory_space<vmem>>, vector<10x96xf32>
    %6 = arith.truncf %5 : vector<10x96xf32> to vector<10x96xbf16>
    %cst = arith.constant dense<0.000000e+00> : vector<10x10xf32>
    %7 = tpu.matmul %4, %6, %cst {dimension_numbers = #tpu.dot_dimension_numbers<[1], [1], [0], [0], [0, 0, 1, 0], [], []>} : vector<10x96xbf16>, vector<10x96xbf16>, vector<10x10xf32> -> vector<10x10xf32>
    %c0_5 = arith.constant 0 : index
    %c0_6 = arith.constant 0 : index
    %8 = vector.load %arg5[%c0_5, %c0_6] : memref<10x10xf32, #tpu.memory_space<vmem>>, vector<10x10xf32>
    tpu.vector_store %arg5[%c0_5, %c0_6], %7 {strides = array<i32>} : memref<10x10xf32, #tpu.memory_space<vmem>>, vector<10x10xf32>,
    return
  }
  func.func @transform_0(%arg0: i32, %arg1: i32) -> (i32, i32) {
    %c0_i32 = arith.constant 0 : i32
    %c0_i32_0 = arith.constant 0 : i32
    return %arg0, %c0_i32 : i32, i32
  }
  func.func @transform_1(%arg0: i32, %arg1: i32) -> (i32, i32) {
    %c0_i32 = arith.constant 0 : i32
    %c0_i32_0 = arith.constant 0 : i32
    return %arg1, %c0_i32 : i32, i32
  }
  func.func @transform_2(%arg0: i32, %arg1: i32) -> (i32, i32) {
    %c0_i32 = arith.constant 0 : i32
    %c0_i32_0 = arith.constant 0 : i32
    %c0_i32_1 = arith.constant 0 : i32
    return %c0_i32, %c0_i32_0 : i32, i32
  }
  func.func @transform_3(%arg0: i32, %arg1: i32) -> (i32, i32) {
    %c0_i32 = arith.constant 0 : i32
    return %arg0, %arg1 : i32, i32
  }
}

module attributes {stable_mosaic.version = 11 : i64} {
  func.func @_proj_kernel(%arg0: i32, %arg1: memref<10x200xf32, #tpu.memory_space<vmem>>, %arg2: memref<10x200xf32, #tpu.memory_space<vmem>>, %arg3: memref<200x96xbf16, #tpu.memory_space<vmem>>, %arg4: memref<200x96xbf16, #tpu.memory_space<vmem>>, %arg5: memref<1x96xf32, #tpu.memory_space<vmem>>, %arg6: memref<1x96xf32, #tpu.memory_space<vmem>>, %arg7: memref<10x96xf32, #tpu.memory_space<vmem>>, %arg8: memref<10x96xf32, #tpu.memory_space<vmem>>) attributes {dimension_semantics = [#tpu.dimension_semantics<parallel>], iteration_bounds = array<i64: 1>, scalar_prefetch = 0 : i64, scratch_operands = 0 : i64, tpu.core_type = #tpu.core_type<tc>, window_params = [{transform_indices = @transform_0, window_bounds = array<i64: 10, 200>}, {transform_indices = @transform_1, window_bounds = array<i64: 10, 200>}, {pipeline_mode = #tpu.pipeline_mode<synchronous>, transform_indices = @transform_2, window_bounds = array<i64: 200, 96>}, {pipeline_mode = #tpu.pipeline_mode<synchronous>, transform_indices = @transform_3, window_bounds = array<i64: 200, 96>}, {pipeline_mode = #tpu.pipeline_mode<synchronous>, transform_indices = @transform_4, window_bounds = array<i64: 1, 96>}, {pipeline_mode = #tpu.pipeline_mode<synchronous>, transform_indices = @transform_5, window_bounds = array<i64: 1, 96>}, {transform_indices = @transform_6, window_bounds = array<i64: 10, 96>}, {transform_indices = @transform_7, window_bounds = array<i64: 10, 96>}]} {
    %c0 = arith.constant 0 : index
    %c0_0 = arith.constant 0 : index
    %0 = vector.load %arg1[%c0, %c0_0] : memref<10x200xf32, #tpu.memory_space<vmem>>, vector<10x200xf32>
    %1 = arith.truncf %0 : vector<10x200xf32> to vector<10x200xbf16>
    %c0_1 = arith.constant 0 : index
    %c0_2 = arith.constant 0 : index
    %2 = vector.load %arg3[%c0_1, %c0_2] : memref<200x96xbf16, #tpu.memory_space<vmem>>, vector<200x96xbf16>
    %cst = arith.constant dense<0.000000e+00> : vector<10x96xf32>
    %3 = tpu.matmul %1, %2, %cst {dimension_numbers = #tpu.dot_dimension_numbers<[1], [0], [0], [1], [0, 0, 1, 1], [], []>} : vector<10x200xbf16>, vector<200x96xbf16>, vector<10x96xf32> -> vector<10x96xf32>
    %c0_3 = arith.constant 0 : index
    %c0_4 = arith.constant 0 : index
    %4 = vector.load %arg5[%c0_3, %c0_4] : memref<1x96xf32, #tpu.memory_space<vmem>>, vector<1x96xf32>
    %5 = vector.broadcast %4 : vector<1x96xf32> to vector<10x96xf32>
    %6 = arith.addf %3, %5 : vector<10x96xf32>
    %7 = arith.mulf %6, %6 : vector<10x96xf32>
    %cst_5 = arith.constant dense<0.000000e+00> : vector<10xf32>
    %8 = vector.multi_reduction <add>, %7, %cst_5 [1] : vector<10x96xf32> to vector<10xf32>
    %9 = vector.shape_cast %8 : vector<10xf32> to vector<10x1xf32>
    %10 = math.sqrt %9 : vector<10x1xf32>
    %cst_6 = arith.constant 9.99999993E-9 : f32
    %11 = vector.broadcast %cst_6 : f32 to vector<10x1xf32>
    %12 = arith.addf %10, %11 : vector<10x1xf32>
    %13 = vector.broadcast %12 : vector<10x1xf32> to vector<10x96xf32>
    %14 = arith.divf %6, %13 : vector<10x96xf32>
    %c0_7 = arith.constant 0 : index
    %c0_8 = arith.constant 0 : index
    %15 = vector.load %arg7[%c0_7, %c0_8] : memref<10x96xf32, #tpu.memory_space<vmem>>, vector<10x96xf32>
    tpu.vector_store %arg7[%c0_7, %c0_8], %14 {strides = array<i32>} : memref<10x96xf32, #tpu.memory_space<vmem>>, vector<10x96xf32>,
    %c0_9 = arith.constant 0 : index
    %c0_10 = arith.constant 0 : index
    %16 = vector.load %arg2[%c0_9, %c0_10] : memref<10x200xf32, #tpu.memory_space<vmem>>, vector<10x200xf32>
    %17 = arith.truncf %16 : vector<10x200xf32> to vector<10x200xbf16>
    %c0_11 = arith.constant 0 : index
    %c0_12 = arith.constant 0 : index
    %18 = vector.load %arg4[%c0_11, %c0_12] : memref<200x96xbf16, #tpu.memory_space<vmem>>, vector<200x96xbf16>
    %cst_13 = arith.constant dense<0.000000e+00> : vector<10x96xf32>
    %19 = tpu.matmul %17, %18, %cst_13 {dimension_numbers = #tpu.dot_dimension_numbers<[1], [0], [0], [1], [0, 0, 1, 1], [], []>} : vector<10x200xbf16>, vector<200x96xbf16>, vector<10x96xf32> -> vector<10x96xf32>
    %c0_14 = arith.constant 0 : index
    %c0_15 = arith.constant 0 : index
    %20 = vector.load %arg6[%c0_14, %c0_15] : memref<1x96xf32, #tpu.memory_space<vmem>>, vector<1x96xf32>
    %21 = vector.broadcast %20 : vector<1x96xf32> to vector<10x96xf32>
    %22 = arith.addf %19, %21 : vector<10x96xf32>
    %23 = arith.mulf %22, %22 : vector<10x96xf32>
    %cst_16 = arith.constant dense<0.000000e+00> : vector<10xf32>
    %24 = vector.multi_reduction <add>, %23, %cst_16 [1] : vector<10x96xf32> to vector<10xf32>
    %25 = vector.shape_cast %24 : vector<10xf32> to vector<10x1xf32>
    %26 = math.sqrt %25 : vector<10x1xf32>
    %cst_17 = arith.constant 9.99999993E-9 : f32
    %27 = vector.broadcast %cst_17 : f32 to vector<10x1xf32>
    %28 = arith.addf %26, %27 : vector<10x1xf32>
    %29 = vector.broadcast %28 : vector<10x1xf32> to vector<10x96xf32>
    %30 = arith.divf %22, %29 : vector<10x96xf32>
    %c0_18 = arith.constant 0 : index
    %c0_19 = arith.constant 0 : index
    %31 = vector.load %arg8[%c0_18, %c0_19] : memref<10x96xf32, #tpu.memory_space<vmem>>, vector<10x96xf32>
    tpu.vector_store %arg8[%c0_18, %c0_19], %30 {strides = array<i32>} : memref<10x96xf32, #tpu.memory_space<vmem>>, vector<10x96xf32>,
    return
  }
  func.func @transform_0(%arg0: i32) -> (i32, i32) {
    %c0_i32 = arith.constant 0 : i32
    %c0_i32_0 = arith.constant 0 : i32
    return %arg0, %c0_i32 : i32, i32
  }
  func.func @transform_1(%arg0: i32) -> (i32, i32) {
    %c0_i32 = arith.constant 0 : i32
    %c0_i32_0 = arith.constant 0 : i32
    return %arg0, %c0_i32 : i32, i32
  }
  func.func @transform_2(%arg0: i32) -> (i32, i32) {
    %c0_i32 = arith.constant 0 : i32
    %c0_i32_0 = arith.constant 0 : i32
    %c0_i32_1 = arith.constant 0 : i32
    return %c0_i32, %c0_i32_0 : i32, i32
  }
  func.func @transform_3(%arg0: i32) -> (i32, i32) {
    %c0_i32 = arith.constant 0 : i32
    %c0_i32_0 = arith.constant 0 : i32
    %c0_i32_1 = arith.constant 0 : i32
    return %c0_i32, %c0_i32_0 : i32, i32
  }
  func.func @transform_4(%arg0: i32) -> (i32, i32) {
    %c0_i32 = arith.constant 0 : i32
    %c0_i32_0 = arith.constant 0 : i32
    %c0_i32_1 = arith.constant 0 : i32
    return %c0_i32, %c0_i32_0 : i32, i32
  }
  func.func @transform_5(%arg0: i32) -> (i32, i32) {
    %c0_i32 = arith.constant 0 : i32
    %c0_i32_0 = arith.constant 0 : i32
    %c0_i32_1 = arith.constant 0 : i32
    return %c0_i32, %c0_i32_0 : i32, i32
  }
  func.func @transform_6(%arg0: i32) -> (i32, i32) {
    %c0_i32 = arith.constant 0 : i32
    %c0_i32_0 = arith.constant 0 : i32
    return %arg0, %c0_i32 : i32, i32
  }
  func.func @transform_7(%arg0: i32) -> (i32, i32) {
    %c0_i32 = arith.constant 0 : i32
    %c0_i32_0 = arith.constant 0 : i32
    return %arg0, %c0_i32 : i32, i32
  }
}

</mosaic_0001>

<bundles_post_ra>
// kernel: clip_multimodal_forward.3
= control target key start
LH: loop header
LB: loop body
LE: loop exit
PB: predicated region body
PF: predicated region fallthrough
CT: control target
= control target key end

     0   :  { %v93_v0 = vmov 0.0   ;;  %vm26_vm0 = vcmask 785408   ;;  %vm94_vm1 = vmmov 0   ;;  %vm74_vm2 = vcmask 80896   ;;  %s136_s1 = inlined_call_operand.vmem [shape: f32[10,96], index: 1, kind: input, shape index: {}]   ;;  %s137_s0 = inlined_call_operand.vmem [shape: f32[10,96], index: 0, kind: input, shape index: {}]   ;;  %s138_s2 = inlined_call_operand.<no memory space> [shape: f32[1,1], index: 2, kind: input, shape index: {}]   ;;  %s139_s3 = inlined_call_operand.vmem [shape: f32[10,10], index: 3, kind: output, shape index: {}]  }
   0x1   :  { %85 = vmatprep.subr.bf16.mxu0 %v93_v0  ;;  %v23_v1 = vld [vmem:[%s136_s1] sm:$0xff]  ;;  %v24_v2 = vld [vmem:[%s136_s1 + $0x8] sm:$0x3]  ;;  %87 = vmatprep.mubr.msk.bf16.mxu0 %vm94_vm1, %v93_v0  ;;  %v19_v4 = vstv %s138_s2  ;;  %vm76_vm3 = vcmask 74752  }
   0x2   :  { %v16_v3 = vld [vmem:[%s137_s0] sm:$0xff]  ;;  %v25_v5 = vpack.c.bf16 %v24_v2, %v23_v1  ;;  %v17_v6 = vld [vmem:[%s137_s0 + $0x8] sm:$0x3] }
   0x3   :  { %v20_v8 = vmul.f32 %v19_v4, %v16_v3  ;;  %v21_v9 = vmul.f32 %v19_v4, %v17_v6 }
   0x4   :  { %v31_v7 = vsel %vm26_vm0, %v25_v5, 0 }
   0x5   :  { %86 = vmatpush3.bf16.xpose.msra.mxu0 %v31_v7  ;;  %v22_v10 = vpack.c.bf16 %v21_v9, %v20_v8 }
   0xc   :  { %88 = vmatmul.mubr.msk.bf16.vlgmr.msra.gmra.mrb[0].mxu0 %vm26_vm0, %v22_v10 }
  0xdf   :  { %v67_v11 = vpop.f32.mrb[0].mxu0 }
  0xe0   :  { %75 = vst.msk [vmem:[%s139_s3] sm:$0xff] %vm74_vm2, %v67_v11  ;;  %v89_v12 = vpop.f32.mrb[1].mxu0 }
  0xe1   :  { %v70_v13 = vpop.f32.mrb[2].mxu0 }
  0xe2   :  { %77 = vst.msk [vmem:[%s139_s3 + $0x8] sm:$0x3] %vm76_vm3, %v70_v13  ;;  %v90_v14 = vpop.f32.mrb[3].mxu0 }

// kernel: clip_multimodal_forward.2
= control target key start
LH: loop header
LB: loop body
LE: loop exit
PB: predicated region body
PF: predicated region fallthrough
CT: control target
= control target key end

     0   :  { %v491_v0 = vmov 0   ;;  %vm139_vm0 = vcmask 588800   ;;  %vm143_vm1 = vcmask 1043456   ;;  %vm190_vm2 = vcmask 785408   ;;  %s706_s2 = inlined_call_operand.vmem [shape: bf16[200,96], index: 2, kind: input, shape index: {}]   ;;  %s707_s3 = inlined_call_operand.vmem [shape: bf16[200,96], index: 3, kind: input, shape index: {}]   ;;  %s708_s0 = inlined_call_operand.vmem [shape: f32[10,200], index: 0, kind: input, shape index: {}]   ;;  %s709_s1 = inlined_call_operand.vmem [shape: f32[10,200], index: 1, kind: input, shape index: {}]   ;;  %s710_s4 = inlined_call_operand.vmem [shape: f32[1,96], index: 4, kind: input, shape index: {}]   ;;  %s711_s5 = inlined_call_operand.vmem [shape: f32[1,96], index: 5, kind: input, shape index: {}]   ;;  %s712_s6 = inlined_call_operand.vmem [shape: f32[10,96], index: 6, kind: output, shape index: {0}]   ;;  %s713_s7 = inlined_call_operand.vmem [shape: f32[10,96], index: 7, kind: output, shape index: {1}]  }
   0x1   :  { %147 = vmatprep.subr.bf16.mxu0 %v491_v0  ;;  %339 = vmatprep.subr.bf16.mxu1 %v491_v0  ;;  %v449_v1 = vld [vmem:[%s706_s2] sm:$0xff]   ;;  %v451_v3 = vld [vmem:[%s706_s2 + $0x8] sm:$0xff]   ;;  %v453_v5 = vld [vmem:[%s706_s2 + $0x10] sm:$0xff]   ;;  %vm194_vm3 = vcmask 779264  }
   0x2   :  { %v450_v2 = vld [vmem:[%s707_s3] sm:$0xff]   ;;  %148 = vmatpush1.bf16.msra.mxu0 %v449_v1  ;;  %v452_v4 = vld [vmem:[%s707_s3 + $0x8] sm:$0xff]   ;;  %v454_v6 = vld [vmem:[%s707_s3 + $0x10] sm:$0xff]  }
   0x3   :  { %340 = vmatpush1.bf16.msra.mxu1 %v450_v2  ;;  %149 = vmatprep.subr.bf16.mxu0 %v491_v0  ;;  %v455_v7 = vld [vmem:[%s706_s2 + $0x18] sm:$0xff]   ;;  %v457_v9 = vld [vmem:[%s706_s2 + $0x20] sm:$0xff]   ;;  %v459_v11 = vld [vmem:[%s706_s2 + $0x28] sm:$0xff]  }
   0x4   :  { %341 = vmatprep.subr.bf16.mxu1 %v491_v0  ;;  %v456_v8 = vld [vmem:[%s707_s3 + $0x18] sm:$0xff]   ;;  %v458_v10 = vld [vmem:[%s707_s3 + $0x20] sm:$0xff]   ;;  %v460_v12 = vld [vmem:[%s707_s3 + $0x28] sm:$0xff]  }
   0x5   :  { %v461_v13 = vld [vmem:[%s706_s2 + $0x30] sm:$0xff]   ;;  %v27_v15 = vld [vmem:[%s708_s0 + $0x8] sm:$0xff]  ;;  %v29_v16 = vld [vmem:[%s708_s0 + $0x18] sm:$0x3] }
   0x6   :  { %150 = vmatpush1.bf16.msra.mxu0 %v451_v3  ;;  %v462_v14 = vld [vmem:[%s707_s3 + $0x30] sm:$0xff]   ;;  %v463_v17 = vld [vmem:[%s706_s2 + $0x38] sm:$0xff]   ;;  %v31_v18 = vpack.c.bf16 %v29_v16, %v27_v15  ;;  %v221_v19 = vld [vmem:[%s709_s1 + $0x8] sm:$0xff] }
   0x7   :  { %342 = vmatpush1.bf16.msra.mxu1 %v452_v4  ;;  %151 = vmatprep.subr.bf16.mxu0 %v491_v0  ;;  %v223_v20 = vld [vmem:[%s709_s1 + $0x18] sm:$0x3]  ;;  %v465_v23 = vld [vmem:[%s706_s2 + $0x40] sm:$0xff]   ;;  %v467_v25 = vld [vmem:[%s706_s2 + $0x48] sm:$0xff]  }
   0x8   :  { %343 = vmatprep.subr.bf16.mxu1 %v491_v0  ;;  %v464_v21 = vld [vmem:[%s707_s3 + $0x38] sm:$0xff]   ;;  %v225_v22 = vpack.c.bf16 %v223_v20, %v221_v19  ;;  %432 = vmatprep.mubr.msk.bf16.mxu0 %vm139_vm0, %v31_v18  ;;  %v466_v24 = vld [vmem:[%s707_s3 + $0x40] sm:$0xff]   ;;  %v468_v26 = vld [vmem:[%s707_s3 + $0x48] sm:$0xff]  }
   0x9   :  { %v469_v27 = vld [vmem:[%s706_s2 + $0x50] sm:$0xff]   ;;  %v471_v29 = vld [vmem:[%s706_s2 + $0x58] sm:$0xff]   ;;  %v473_v31 = vld [vmem:[%s706_s2 + $0x60] ss:$0 sps:$4 sm:$0xff]  }
   0xa   :  { %152 = vmatpush1.bf16.msra.mxu0 %v453_v5  ;;  %447 = vmatprep.mubr.msk.bf16.mxu1 %vm139_vm0, %v225_v22  ;;  %v470_v28 = vld [vmem:[%s707_s3 + $0x50] sm:$0xff]   ;;  %v472_v30 = vld [vmem:[%s707_s3 + $0x58] sm:$0xff]   ;;  %v474_v32 = vld [vmem:[%s707_s3 + $0x60] ss:$0 sps:$4 sm:$0xff]   ;;  %v145_v35 = vsel %vm143_vm1, %v473_v31, 0 }
   0xb   :  { %344 = vmatpush1.bf16.msra.mxu1 %v454_v6  ;;  %153 = vmatprep.subr.bf16.mxu0 %v491_v0  ;;  %v26_v33 = vld [vmem:[%s708_s0] sm:$0xff]  ;;  %v28_v34 = vld [vmem:[%s708_s0 + $0x10] sm:$0x3]  ;;  %v337_v38 = vsel %vm143_vm1, %v474_v32, 0 }
   0xc   :  { %345 = vmatprep.subr.bf16.mxu1 %v491_v0  ;;  %v220_v36 = vld [vmem:[%s709_s1] sm:$0xff]  ;;  %v222_v37 = vld [vmem:[%s709_s1 + $0x10] sm:$0x3]  ;;  %v30_v39 = vpack.c.bf16 %v28_v34, %v26_v33 }
   0xd   :  { %v224_v40 = vpack.c.bf16 %v222_v37, %v220_v36  ;;  %v418_v41 = vld [vmem:[%s710_s4] ss:$0 sm:$0xff] }
   0xe   :  { %154 = vmatpush1.bf16.msra.mxu0 %v455_v7  ;;  %v433_v42 = vld [vmem:[%s711_s5] ss:$0 sm:$0xff] }
   0xf   :  { %346 = vmatpush1.bf16.msra.mxu1 %v456_v8  ;;  %155 = vmatprep.subr.bf16.mxu0 %v491_v0 }
  0x10   :  { %347 = vmatprep.subr.bf16.mxu1 %v491_v0 }
  0x12   :  { %156 = vmatpush1.bf16.msra.mxu0 %v457_v9 }
  0x13   :  { %348 = vmatpush1.bf16.msra.mxu1 %v458_v10  ;;  %157 = vmatprep.subr.bf16.mxu0 %v491_v0 }
  0x14   :  { %349 = vmatprep.subr.bf16.mxu1 %v491_v0 }
  0x16   :  { %158 = vmatpush1.bf16.msra.mxu0 %v459_v11 }
  0x17   :  { %350 = vmatpush1.bf16.msra.mxu1 %v460_v12  ;;  %159 = vmatprep.subr.bf16.mxu0 %v491_v0 }
  0x18   :  { %351 = vmatprep.subr.bf16.mxu1 %v491_v0 }
  0x1a   :  { %160 = vmatpush1.bf16.msra.mxu0 %v461_v13 }
  0x1b   :  { %352 = vmatpush1.bf16.msra.mxu1 %v462_v14  ;;  %161 = vmatprep.subr.bf16.mxu0 %v491_v0 }
  0x1c   :  { %353 = vmatprep.subr.bf16.mxu1 %v491_v0 }
  0x1e   :  { %162 = vmatpush1.bf16.msra.mxu0 %v463_v17 }
  0x1f   :  { %354 = vmatpush1.bf16.msra.mxu1 %v464_v21  ;;  %163 = vmatprep.subr.bf16.mxu0 %v491_v0 }
  0x20   :  { %355 = vmatprep.subr.bf16.mxu1 %v491_v0 }
  0x22   :  { %164 = vmatpush1.bf16.msra.mxu0 %v465_v23 }
  0x23   :  { %356 = vmatpush1.bf16.msra.mxu1 %v466_v24  ;;  %165 = vmatprep.subr.bf16.mxu0 %v491_v0 }
  0x24   :  { %357 = vmatprep.subr.bf16.mxu1 %v491_v0 }
  0x26   :  { %166 = vmatpush1.bf16.msra.mxu0 %v467_v25 }
  0x27   :  { %358 = vmatpush1.bf16.msra.mxu1 %v468_v26  ;;  %167 = vmatprep.subr.bf16.mxu0 %v491_v0 }
  0x28   :  { %359 = vmatprep.subr.bf16.mxu1 %v491_v0 }
  0x2a   :  { %168 = vmatpush1.bf16.msra.mxu0 %v469_v27 }
  0x2b   :  { %360 = vmatpush1.bf16.msra.mxu1 %v470_v28  ;;  %169 = vmatprep.subr.bf16.mxu0 %v491_v0 }
  0x2c   :  { %361 = vmatprep.subr.bf16.mxu1 %v491_v0 }
  0x2e   :  { %170 = vmatpush1.bf16.msra.mxu0 %v471_v29 }
  0x2f   :  { %362 = vmatpush1.bf16.msra.mxu1 %v472_v30  ;;  %171 = vmatprep.subr.bf16.mxu0 %v491_v0 }
  0x30   :  { %363 = vmatprep.subr.bf16.mxu1 %v491_v0 }
  0x32   :  { %172 = vmatpush1.bf16.msra.mxu0 %v145_v35 }
  0x33   :  { %364 = vmatpush1.bf16.msra.mxu1 %v337_v38 }
  0x35   :  { %180 = vmatmul.mubr.bf16.vlgmr.msra.gmra.mrb[0].mxu0 %v30_v39 }
  0x36   :  { %372 = vmatmul.mubr.bf16.vlgmr.msra.gmra.mrb[0].mxu1 %v224_v40 }
 0x108   :  { %v181_v43 = vpop.f32.mrb[0].mxu0 }
 0x109   :  { %v666_v44 = vadd.f32 %v418_v41, %v181_v43  ;;  %v373_v45 = vpop.f32.mrb[0].mxu1  ;;  %v183_v46 = vpop.f32.mrb[1].mxu0 }
 0x10a   :  { %v668_v47 = vadd.f32 %v433_v42, %v373_v45  ;;  %v375_v48 = vpop.f32.mrb[1].mxu1  ;;  %v184_v49 = vpop.f32.mrb[2].mxu0 }
 0x10b   :  { %v670_v50 = vadd.f32 %v418_v41, %v184_v49  ;;  %v376_v51 = vpop.f32.mrb[2].mxu1  ;;  %v186_v52 = vpop.f32.mrb[3].mxu0  ;;  %v188_v53 = vmul.f32 %v666_v44, %v666_v44 }
 0x10c   :  { %v674_v54 = vadd.f32 %v433_v42, %v376_v51  ;;  %v378_v55 = vpop.f32.mrb[3].mxu1  ;;  %v380_v56 = vmul.f32 %v668_v47, %v668_v47 }
 0x10d   :  { %v191_v57 = vsel %vm190_vm2, %v188_v53, 0.0  ;;  %v189_v58 = vmul.f32 %v670_v50, %v670_v50 }
 0x10e   :  { %v382_v59 = vsel %vm190_vm2, %v380_v56, 0.0  ;;  %192 = vadd.xlane.f32.xlu0 %v191_v57  ;;  %v381_v60 = vmul.f32 %v674_v54, %v674_v54 }
 0x10f   :  { %383 = vadd.xlane.f32.xlu1 %v382_v59  ;;  %v195_v61 = vsel %vm194_vm3, %v189_v58, 0.0 }
 0x110   :  { %v385_v62 = vsel %vm194_vm3, %v381_v60, 0.0 }
 0x112   :  { %196 = vadd.xlane.f32.xlu0 %v195_v61 }
 0x113   :  { %386 = vadd.xlane.f32.xlu1 %v385_v62 }
 0x19b   :  { %v193_v63 = vpop.xlane.xlu0 %192 }
 0x19c   :  { %v384_v0 = vpop.xlane.xlu1 %383  ;;  %475 = vrsqrt.f32 %v193_v63  ;;  %vm200_vm4 = vcmp.eq.f32.partialorder %v193_v63, inf  ;;  %v203_v7 = vand.u32 2147483648, %v193_v63  ;;  %vm202_vm6 = vcmp.eq.f32.partialorder %v193_v63, 0.0 }
 0x19d   :  { %477 = vrsqrt.f32 %v384_v0  ;;  %vm390_vm5 = vcmp.eq.f32.partialorder %v384_v0, inf  ;;  %v393_v8 = vand.u32 2147483648, %v384_v0  ;;  %vm392_vm7 = vcmp.eq.f32.partialorder %v384_v0, 0.0 }
 0x19f   :  { %v197_v1 = vpop.xlane.xlu0 %196 }
 0x1a0   :  { %v387_v2 = vpop.xlane.xlu1 %386  ;;  %479 = vrsqrt.f32 %v197_v1  ;;  %vm207_vm8 = vcmp.eq.f32.partialorder %v197_v1, inf  ;;  %vm209_vm9 = vcmp.eq.f32.partialorder %v197_v1, 0.0  ;;  %v210_v19 = vand.u32 2147483648, %v197_v1 }
 0x1a1   :  { %481 = vrsqrt.f32 %v387_v2  ;;  %vm397_vm10 = vcmp.eq.f32.partialorder %v387_v2, inf  ;;  %v400_v20 = vand.u32 2147483648, %v387_v2  ;;  %vm399_vm11 = vcmp.eq.f32.partialorder %v387_v2, 0.0 }
 0x1a6   :  { %v476_v3 = vpop.eup %475 }
 0x1a7   :  { %v478_v4 = vpop.eup %477  ;;  %v199_v5 = vmul.f32 %v476_v3, %v193_v63 }
 0x1a8   :  { %v389_v6 = vmul.f32 %v478_v4, %v384_v0 }
 0x1a9   :  { %v201_v9 = vsel %vm200_vm4, %v193_v63, %v199_v5 }
 0x1aa   :  { %v480_v10 = vpop.eup %479  ;;  %v391_v11 = vsel %vm390_vm5, %v384_v0, %v389_v6  ;;  %v204_v12 = vsel %vm202_vm6, %v203_v7, %v201_v9 }
 0x1ab   :  { %v482_v13 = vpop.eup %481  ;;  %v394_v14 = vsel %vm392_vm7, %v393_v8, %v391_v11  ;;  %v212_v15 = vadd.f32 1e-08, %v204_v12  ;;  %v206_v16 = vmul.f32 %v480_v10, %v197_v1 }
 0x1ac   :  { %v402_v17 = vadd.f32 1e-08, %v394_v14  ;;  %v396_v18 = vmul.f32 %v482_v13, %v387_v2 }
 0x1ad   :  { %483 = vrcp.f32 %v212_v15  ;;  %v208_v21 = vsel %vm207_vm8, %v197_v1, %v206_v16 }
 0x1ae   :  { %485 = vrcp.f32 %v402_v17  ;;  %v398_v22 = vsel %vm397_vm10, %v387_v2, %v396_v18  ;;  %v211_v23 = vsel %vm209_vm9, %v210_v19, %v208_v21 }
 0x1af   :  { %v401_v24 = vsel %vm399_vm11, %v400_v20, %v398_v22  ;;  %v213_v25 = vadd.f32 1e-08, %v211_v23 }
 0x1b0   :  { %v403_v26 = vadd.f32 1e-08, %v401_v24 }
 0x1b1   :  { %487 = vrcp.f32 %v213_v25 }
 0x1b2   :  { %489 = vrcp.f32 %v403_v26 }
 0x1b7   :  { %v484_v27 = vpop.eup %483 }
 0x1b8   :  { %v486_v28 = vpop.eup %485  ;;  %v215_v29 = vmul.f32 %v484_v27, %v666_v44 }
 0x1b9   :  { %v405_v30 = vmul.f32 %v486_v28, %v668_v47 }
 0x1ba   :  { %218 = vst.msk [vmem:[%s712_s6] sm:$0xff] %vm190_vm2, %v215_v29 }
 0x1bb   :  { %v488_v31 = vpop.eup %487  ;;  %408 = vst.msk [vmem:[%s713_s7] sm:$0xff] %vm190_vm2, %v405_v30 }
 0x1bc   :  { %v490_v32 = vpop.eup %489  ;;  %v217_v33 = vmul.f32 %v488_v31, %v670_v50 }
 0x1bd   :  { %v407_v34 = vmul.f32 %v490_v32, %v674_v54 }
 0x1be   :  { %219 = vst.msk [vmem:[%s712_s6 + $0x8] sm:$0x3] %vm194_vm3, %v217_v33 }
 0x1bf   :  { %409 = vst.msk [vmem:[%s713_s7 + $0x8] sm:$0x3] %vm194_vm3, %v407_v34 }

</bundles_post_ra>
